<compile_context>
chip_gen: v7x
topology: tpu7x:2x2x1
jax: 0.10.0
libtpu: 0.0.40
codegen_flags: <defaults>
</compile_context>

<pallas_src>
import jax
import jax.numpy as jnp
from jax.experimental import pallas as pl
from jax.experimental.pallas import tpu as pltpu


def _fullmodel_kernel(patches_ref, w_ref, b_ref, lab_ref, loss_ref, logits_ref):
    # patches_ref: (HW, K)    bf16 im2col patches for this image (K = 9*Cin)
    # w_ref:       (Cout, K)  bf16 flattened conv weights
    # b_ref:       (Cout, 1)  f32 conv bias
    # lab_ref:     (1, HW)    int32 pixel labels
    # loss_ref:    (1, 128)   f32 per-tile partial CE sum (broadcast, lane-dense)
    # logits_ref:  (Cout, HW) f32 conv output, class-major, lane-dense (HW % 128 == 0)
    Cout, HW = logits_ref.shape

    # 3x3 "same" conv == one MXU matmul, contracting over the trailing K axis
    # of both operands (no transposed patch matrix needed in HBM).
    logits = jax.lax.dot_general(
        w_ref[...], patches_ref[...],
        dimension_numbers=(((1,), (1,)), ((), ())),
        preferred_element_type=jnp.float32) + b_ref[...]        # (Cout, HW) f32
    logits_ref[...] = logits                                    # dense vst, HW = 2*128

    # Cross-entropy (sum over this tile's pixels), class axis on the sublanes.
    labels = lab_ref[...]                                       # (1, HW)
    m = jnp.max(logits, axis=0, keepdims=True)                  # (1, HW)
    lse = m + jnp.log(jnp.sum(jnp.exp(logits - m), axis=0, keepdims=True))
    cls_ids = jax.lax.broadcasted_iota(jnp.int32, (Cout, HW), 0)
    # TODO(synk): PyTorch ignore_index (-100) / out-of-range labels not handled.
    picked = jnp.sum(jnp.where(cls_ids == labels, logits, 0.0),
                     axis=0, keepdims=True)                     # (1, HW)
    partial = jnp.sum(lse - picked)                             # scalar partial sum
    loss_ref[...] = jnp.broadcast_to(partial, (1, 128)).astype(jnp.float32)


@jax.jit
def fullmodel_forward(x_nchw, labels, weight, bias):
    """x_nchw: (N, Cin, H, W) f32; labels: (N, H, W) int;
    weight: (Cout, Cin, 3, 3) f32 (PyTorch conv layout); bias: (Cout,) f32.
    Returns (loss[1], logits[N, Cout, H, W]) matching FullModel.forward."""
    N, Cin, H, W = x_nchw.shape
    Cout = weight.shape[0]
    HW = H * W
    K = 9 * Cin
    assert HW % 128 == 0, "pixel tile must be lane-dense (H*W multiple of 128)"

    # Wrapper-side im2col in its NATURAL layout (N, HW, K) -- no transpose.
    x_nhwc = jnp.transpose(x_nchw, (0, 2, 3, 1))
    x_pad = jnp.pad(x_nhwc, ((0, 0), (1, 1), (1, 1), (0, 0)))
    taps = [x_pad[:, dy:dy + H, dx:dx + W, :].reshape(N, HW, Cin)
            for dy in range(3) for dx in range(3)]
    patches = jnp.concatenate(taps, axis=-1).astype(jnp.bfloat16)      # (N, HW, K)
    # (Cout, Cin, 3, 3) -> (Cout, dy, dx, Cin) -> (Cout, K); matches tap order.
    w_flat = jnp.transpose(weight, (0, 2, 3, 1)).reshape(Cout, K).astype(jnp.bfloat16)
    b_col = bias.reshape(Cout, 1).astype(jnp.float32)
    lab = labels.astype(jnp.int32).reshape(N, 1, HW)

    cost = pl.CostEstimate(
        flops=2 * Cout * K * N * HW,
        transcendentals=(Cout + 1) * N * HW,
        bytes_accessed=(N * HW * K * 2 + Cout * K * 2 + N * HW * 4
                        + N * Cout * HW * 4 + N * 128 * 4),
    )

    loss_parts, logits_flat = pl.pallas_call(
        _fullmodel_kernel,
        grid=(N,),
        in_specs=[
            pl.BlockSpec((None, HW, K), lambda n: (n, 0, 0)),      # patches tile
            pl.BlockSpec((Cout, K), lambda n: (0, 0)),             # weights (resident)
            pl.BlockSpec((Cout, 1), lambda n: (0, 0)),             # bias (resident)
            pl.BlockSpec((None, 1, HW), lambda n: (n, 0, 0)),      # labels tile
        ],
        out_specs=[
            pl.BlockSpec((None, 1, 128), lambda n: (n, 0, 0)),     # per-tile loss slab
            pl.BlockSpec((None, Cout, HW), lambda n: (n, 0, 0)),   # logits tile
        ],
        out_shape=[
            jax.ShapeDtypeStruct((N, 1, 128), jnp.float32),
            jax.ShapeDtypeStruct((N, Cout, HW), jnp.float32),
        ],
        compiler_params=pltpu.CompilerParams(
            dimension_semantics=("parallel",),
            vmem_limit_bytes=32 * 1024 * 1024),
        cost_estimate=cost,
    )(patches, w_flat, b_col, lab)

    # Reduce per-tile partial sums (each tile broadcast its scalar across lanes).
    loss = (jnp.sum(loss_parts[:, 0, 0]) / jnp.float32(N * HW)).reshape(1)
    # (N, Cout, HW) is already NCHW up to a free contiguous reshape (no transpose).
    logits_nchw = logits_flat.reshape(N, Cout, H, W)
    return loss, logits_nchw


if __name__ == "__main__":
    key = jax.random.PRNGKey(0)
    k_x, k_lab, k_w, k_b = jax.random.split(key, 4)

    N, Cin, H, W, Cout = 2, 4, 16, 16, 8
    x = jax.random.normal(k_x, (N, Cin, H, W), jnp.float32)
    labels = jax.random.randint(k_lab, (N, H, W), 0, Cout, jnp.int32)

    # Deterministic "Kaiming-ish" init for the conv parameters.
    fan_in = Cin * 3 * 3
    weight = jax.random.normal(k_w, (Cout, Cin, 3, 3), jnp.float32) / jnp.sqrt(fan_in)
    bias = 0.01 * jax.random.normal(k_b, (Cout,), jnp.float32)

    loss, logits = fullmodel_forward(x, labels, weight, bias)
    jax.block_until_ready((loss, logits))
    assert loss.shape == (1,) and logits.shape == (N, Cout, H, W)

    # Pure-JAX reference (high-precision conv + log-softmax cross-entropy).
    logits_ref = jax.lax.conv_general_dilated(
        x, weight, window_strides=(1, 1), padding="SAME",
        dimension_numbers=("NCHW", "OIHW", "NCHW"),
        precision=jax.lax.Precision.HIGHEST) + bias.reshape(1, Cout, 1, 1)
    logp = jax.nn.log_softmax(logits_ref, axis=1)
    nll = -jnp.take_along_axis(logp, labels[:, None, :, :], axis=1)
    loss_ref = jnp.mean(nll)

    assert jnp.allclose(logits, logits_ref, atol=5e-2, rtol=5e-2), "logits mismatch"
    assert jnp.allclose(loss[0], loss_ref, atol=5e-2, rtol=5e-2), "loss mismatch"
    print("KERNEL_OK")
</pallas_src>

<mosaic_0001>
module attributes {stable_mosaic.version = 11 : i64} {
  func.func @_fullmodel_kernel(%arg0: i32, %arg1: memref<1x256x36xbf16, #tpu.memory_space<vmem>>, %arg2: memref<8x36xbf16, #tpu.memory_space<vmem>>, %arg3: memref<8x1xf32, #tpu.memory_space<vmem>>, %arg4: memref<1x1x256xi32, #tpu.memory_space<vmem>>, %arg5: memref<1x1x128xf32, #tpu.memory_space<vmem>>, %arg6: memref<1x8x256xf32, #tpu.memory_space<vmem>>) attributes {dimension_semantics = [#tpu.dimension_semantics<parallel>], iteration_bounds = array<i64: 2>, scalar_prefetch = 0 : i64, scratch_operands = 0 : i64, tpu.core_type = #tpu.core_type<tc>, window_params = [{transform_indices = @transform_0, window_bounds = array<i64: 1, 256, 36>}, {pipeline_mode = #tpu.pipeline_mode<synchronous>, transform_indices = @transform_1, window_bounds = array<i64: 8, 36>}, {pipeline_mode = #tpu.pipeline_mode<synchronous>, transform_indices = @transform_2, window_bounds = array<i64: 8, 1>}, {transform_indices = @transform_3, window_bounds = array<i64: 1, 1, 256>}, {transform_indices = @transform_4, window_bounds = array<i64: 1, 1, 128>}, {transform_indices = @transform_5, window_bounds = array<i64: 1, 8, 256>}]} {
    %c0 = arith.constant 0 : index
    %c0_0 = arith.constant 0 : index
    %0 = vector.load %arg2[%c0, %c0_0] : memref<8x36xbf16, #tpu.memory_space<vmem>>, vector<8x36xbf16>
    %c0_1 = arith.constant 0 : index
    %c0_2 = arith.constant 0 : index
    %c0_3 = arith.constant 0 : index
    %1 = vector.load %arg1[%c0_1, %c0_2, %c0_3] : memref<1x256x36xbf16, #tpu.memory_space<vmem>>, vector<1x256x36xbf16>
    %2 = vector.shape_cast %1 : vector<1x256x36xbf16> to vector<256x36xbf16>
    %cst = arith.constant dense<0.000000e+00> : vector<8x256xf32>
    %3 = tpu.matmul %0, %2, %cst {dimension_numbers = #tpu.dot_dimension_numbers<[1], [1], [0], [0], [0, 0, 1, 0], [], []>} : vector<8x36xbf16>, vector<256x36xbf16>, vector<8x256xf32> -> vector<8x256xf32>
    %c0_4 = arith.constant 0 : index
    %c0_5 = arith.constant 0 : index
    %4 = vector.load %arg3[%c0_4, %c0_5] : memref<8x1xf32, #tpu.memory_space<vmem>>, vector<8x1xf32>
    %5 = vector.broadcast %4 : vector<8x1xf32> to vector<8x256xf32>
    %6 = arith.addf %3, %5 : vector<8x256xf32>
    %c0_6 = arith.constant 0 : index
    %c0_7 = arith.constant 0 : index
    %c0_8 = arith.constant 0 : index
    %7 = vector.load %arg6[%c0_6, %c0_7, %c0_8] : memref<1x8x256xf32, #tpu.memory_space<vmem>>, vector<1x8x256xf32>
    %8 = vector.shape_cast %7 : vector<1x8x256xf32> to vector<8x256xf32>
    %9 = vector.shape_cast %6 : vector<8x256xf32> to vector<1x8x256xf32>
    tpu.vector_store %arg6[%c0_6, %c0_7, %c0_8], %9 {strides = array<i32>} : memref<1x8x256xf32, #tpu.memory_space<vmem>>, vector<1x8x256xf32>,
    %c0_9 = arith.constant 0 : index
    %c0_10 = arith.constant 0 : index
    %c0_11 = arith.constant 0 : index
    %10 = vector.load %arg4[%c0_9, %c0_10, %c0_11] : memref<1x1x256xi32, #tpu.memory_space<vmem>>, vector<1x1x256xi32>
    %11 = vector.shape_cast %10 : vector<1x1x256xi32> to vector<1x256xi32>
    %cst_12 = arith.constant dense<0xFF800000> : vector<256xf32>
    %12 = vector.multi_reduction <maximumf>, %6, %cst_12 [0] : vector<8x256xf32> to vector<256xf32>
    %13 = vector.shape_cast %12 : vector<256xf32> to vector<1x256xf32>
    %14 = vector.broadcast %13 : vector<1x256xf32> to vector<8x256xf32>
    %15 = arith.subf %6, %14 : vector<8x256xf32>
    %16 = math.exp %15 : vector<8x256xf32>
    %cst_13 = arith.constant dense<0.000000e+00> : vector<256xf32>
    %17 = vector.multi_reduction <add>, %16, %cst_13 [0] : vector<8x256xf32> to vector<256xf32>
    %18 = vector.shape_cast %17 : vector<256xf32> to vector<1x256xf32>
    %19 = math.log %18 : vector<1x256xf32>
    %20 = arith.addf %13, %19 : vector<1x256xf32>
    %21 = tpu.iota {dimensions = array<i32: 0>} : vector<8x256xi32>
    %22 = vector.broadcast %11 : vector<1x256xi32> to vector<8x256xi32>
    %23 = arith.cmpi eq, %21, %22 : vector<8x256xi32>
    %cst_14 = arith.constant 0.000000e+00 : f32
    %24 = vector.broadcast %cst_14 : f32 to vector<8x256xf32>
    %25 = arith.select %23, %6, %24 : vector<8x256xi1>, vector<8x256xf32>
    %cst_15 = arith.constant dense<0.000000e+00> : vector<256xf32>
    %26 = vector.multi_reduction <add>, %25, %cst_15 [0] : vector<8x256xf32> to vector<256xf32>
    %27 = vector.shape_cast %26 : vector<256xf32> to vector<1x256xf32>
    %28 = arith.subf %20, %27 : vector<1x256xf32>
    %29 = vector.shape_cast %28 : vector<1x256xf32> to vector<1x1x256xf32>
    %cst_16 = arith.constant dense<0.000000e+00> : vector<1xf32>
    %30 = vector.multi_reduction <add>, %29, %cst_16 [1, 2] : vector<1x1x256xf32> to vector<1xf32>
    %31 = vector.shape_cast %30 : vector<1xf32> to vector<1x1x1xf32>
    %32 = vector.extract %31[0, 0, 0] : f32 from vector<1x1x1xf32>
    %33 = vector.broadcast %32 : f32 to vector<1x128xf32>
    %c0_17 = arith.constant 0 : index
    %c0_18 = arith.constant 0 : index
    %c0_19 = arith.constant 0 : index
    %34 = vector.load %arg5[%c0_17, %c0_18, %c0_19] : memref<1x1x128xf32, #tpu.memory_space<vmem>>, vector<1x1x128xf32>
    %35 = vector.shape_cast %34 : vector<1x1x128xf32> to vector<1x128xf32>
    %36 = vector.shape_cast %33 : vector<1x128xf32> to vector<1x1x128xf32>
    tpu.vector_store %arg5[%c0_17, %c0_18, %c0_19], %36 {strides = array<i32>} : memref<1x1x128xf32, #tpu.memory_space<vmem>>, vector<1x1x128xf32>,
    return
  }
  func.func @transform_0(%arg0: i32) -> (i32, i32, i32) {
    %c0_i32 = arith.constant 0 : i32
    %c0_i32_0 = arith.constant 0 : i32
    %c0_i32_1 = arith.constant 0 : i32
    return %arg0, %c0_i32, %c0_i32_0 : i32, i32, i32
  }
  func.func @transform_1(%arg0: i32) -> (i32, i32) {
    %c0_i32 = arith.constant 0 : i32
    %c0_i32_0 = arith.constant 0 : i32
    %c0_i32_1 = arith.constant 0 : i32
    return %c0_i32, %c0_i32_0 : i32, i32
  }
  func.func @transform_2(%arg0: i32) -> (i32, i32) {
    %c0_i32 = arith.constant 0 : i32
    %c0_i32_0 = arith.constant 0 : i32
    %c0_i32_1 = arith.constant 0 : i32
    return %c0_i32, %c0_i32_0 : i32, i32
  }
  func.func @transform_3(%arg0: i32) -> (i32, i32, i32) {
    %c0_i32 = arith.constant 0 : i32
    %c0_i32_0 = arith.constant 0 : i32
    %c0_i32_1 = arith.constant 0 : i32
    return %arg0, %c0_i32, %c0_i32_0 : i32, i32, i32
  }
  func.func @transform_4(%arg0: i32) -> (i32, i32, i32) {
    %c0_i32 = arith.constant 0 : i32
    %c0_i32_0 = arith.constant 0 : i32
    %c0_i32_1 = arith.constant 0 : i32
    return %arg0, %c0_i32, %c0_i32_0 : i32, i32, i32
  }
  func.func @transform_5(%arg0: i32) -> (i32, i32, i32) {
    %c0_i32 = arith.constant 0 : i32
    %c0_i32_0 = arith.constant 0 : i32
    %c0_i32_1 = arith.constant 0 : i32
    return %arg0, %c0_i32, %c0_i32_0 : i32, i32, i32
  }
}

</mosaic_0001>

<bundles_post_ra>
// kernel: fullmodel_forward.1
= control target key start
LH: loop header
LB: loop body
LE: loop exit
PB: predicated region body
PF: predicated region fallthrough
CT: control target
= control target key end

     0   :  { %s770_s18 = smov 0   ;;  %s841_s0 = inlined_call_operand.vmem [shape: bf16[2,256,36], index: 0, kind: input, shape index: {}]   ;;  %s842_s1 = inlined_call_operand.vmem [shape: bf16[8,36], index: 1, kind: input, shape index: {}]   ;;  %s843_s2 = inlined_call_operand.vmem [shape: f32[8,1], index: 2, kind: input, shape index: {}]   ;;  %s844_s3 = inlined_call_operand.vmem [shape: s32[2,1,256], index: 3, kind: input, shape index: {}]   ;;  %s845_s4 = inlined_call_operand.vmem [shape: f32[2,1,128], index: 4, kind: output, shape index: {0}]   ;;  %s846_s5 = inlined_call_operand.vmem [shape: f32[2,8,256], index: 5, kind: output, shape index: {1}]  }
   0x1 LB: > { %s638_s19 = sadd.s32 4294967295, %s737_s18   ;;  %p642_p0 = scmp.ge.s32.totalorder %s737_s18, 1  ;;  %s737_s18 = sphi %s770_s18, %s16_s18  }
   0x2   : > { %p199_p1 = scmp.lt.s32.totalorder %s737_s18, 3 }
   0x4   : > { %p200_p2 = pnand %p642_p0, %p199_p1 }
   0x5   : > { %p234_p3 = scmp.lt.s32.totalorder (!%p200_p2), %s638_s19, 1  ;;  %vm371_vm0 = vcmask (!%p200_p2), 293888   ;;  %v252_v0 = vld [vmem:[%s842_s1] sm:$0xf] (!%p200_p2)  ;;  %v739_v2 = vmov (!%p200_p2), 0   ;;  %v503_v45 = vlaneseq (!%p200_p2)  ;;  %vm531_vm3 = vcmask (!%p200_p2), 1040384  }
   0x6   : > { %203 = sbr.rel (%p200_p2) target bundleno = 562 (0x232), region = 36  ;;  %v285_v1 = vld [vmem:[%s843_s2] sm:$0xff] (!%p200_p2)  ;;  %685 = vmatprep.mubr.msk.bf16.mxu0 (!%p200_p2), %vm371_vm0, %v252_v0  ;;  %706 = vset.pattern.permute.xlu0 (!%p200_p2), %v739_v2 }
   0x7   : > { %288 = vperm.xlu0 (!%p200_p2), %706, %v285_v1   ;;  %v504_v50 = vshrl.u32 (!%p200_p2), %v503_v45, 7 }
   0x9   : > { %v507_v52 = vsub.s32 (!%p200_p2), 0, %v504_v50  ;;  %v511_v54 = vsub.s32 (!%p200_p2), 1, %v504_v50 }
   0xd   : > { %s848_s19 = smov (!%p234_p3, %s638_s19), 1 }
   0xe   : > { %s667_s24 = sshll.u32 %s848_s19, 7  ;;  %s668_s28 = sshll.u32 %s848_s19, 4 }
   0xf   : > { %s791_s27 = scalar_lea.vmem %s841_s0, %s667_s24  ;;  %s250_s6 = scalar_lea.vmem %s846_s5, %s668_s28 }
  0x10   : > { %v707_v3 = vld [vmem:[%s791_s27 + $0x40] sm:$0xff]   ;;  %v709_v5 = vld [vmem:[%s791_s27 + $0x48] sm:$0xff]   ;;  %v711_v9 = vld [vmem:[%s791_s27 + $0x50] sm:$0xff]   ;;  %s645_s7 = sshll.u32 %s848_s19, 1  ;;  %s245_s13 = scalar_lea.vmem %s845_s4, %s848_s19 }
  0x11   : > { %v708_v4 = vld [vmem:[%s791_s27] sm:$0xff]   ;;  %687 = vmatprep.subr.msk.bf16.mxu0 %vm371_vm0, %v707_v3  ;;  %v710_v7 = vld [vmem:[%s791_s27 + $0x8] sm:$0xff]   ;;  %v712_v10 = vld [vmem:[%s791_s27 + $0x10] sm:$0xff]   ;;  %s242_s10 = scalar_lea.vmem %s844_s3, %s645_s7 }
  0x12   : > { %v376_v6 = vsel %vm371_vm0, %v708_v4, 0  ;;  %v379_v8 = vsel %vm371_vm0, %v710_v7, 0  ;;  %v382_v11 = vsel %vm371_vm0, %v712_v10, 0  ;;  %v713_v12 = vld [vmem:[%s791_s27 + $0x58] sm:$0xff]   ;;  %v715_v15 = vld [vmem:[%s791_s27 + $0x60] sm:$0xff]   ;;  %v717_v18 = vld [vmem:[%s791_s27 + $0x68] sm:$0xff]  }
  0x13   : > { %670 = vmatpush3.bf16.xpose.msra.mxu0 %v376_v6  ;;  %v714_v13 = vld [vmem:[%s791_s27 + $0x18] sm:$0xff]   ;;  %v716_v16 = vld [vmem:[%s791_s27 + $0x20] sm:$0xff]   ;;  %v718_v19 = vld [vmem:[%s791_s27 + $0x28] sm:$0xff]  }
  0x14   : > { %688 = vmatprep.subr.msk.bf16.mxu0 %vm371_vm0, %v709_v5  ;;  %v385_v14 = vsel %vm371_vm0, %v714_v13, 0  ;;  %v388_v17 = vsel %vm371_vm0, %v716_v16, 0  ;;  %v391_v20 = vsel %vm371_vm0, %v718_v19, 0  ;;  %v719_v21 = vld [vmem:[%s791_s27 + $0x70] sm:$0xff]   ;;  %v721_v24 = vld [vmem:[%s791_s27 + $0x78] sm:$0xff]  }
  0x15   : > { %v720_v22 = vld [vmem:[%s791_s27 + $0x30] sm:$0xff]   ;;  %v722_v25 = vld [vmem:[%s791_s27 + $0x38] sm:$0xff]   ;;  %v466_v53 = vld [vmem:[%s242_s10] sm:$0x3] }
  0x16   : > { %v394_v23 = vsel %vm371_vm0, %v720_v22, 0  ;;  %v397_v26 = vsel %vm371_vm0, %v722_v25, 0  ;;  %v508_v55 = vrot.slane %v466_v53, %v507_v52  ;;  %v512_v56 = vrot.slane %v466_v53, %v511_v54 }
  0x18   : > { %vm513_vm1 = vcmp.eq.s32.totalorder %v504_v50, %v508_v55  ;;  %vm514_vm2 = vcmp.eq.s32.totalorder %v504_v50, %v512_v56 }
  0x1b   : > { %672 = vmatpush3.bf16.xpose.msra.mxu0 %v379_v8 }
  0x1c   : > { %689 = vmatprep.subr.msk.bf16.mxu0 %vm371_vm0, %v711_v9 }
  0x23   : > { %674 = vmatpush3.bf16.xpose.msra.mxu0 %v382_v11 }
  0x24   : > { %690 = vmatprep.subr.msk.bf16.mxu0 %vm371_vm0, %v713_v12 }
  0x2b   : > { %676 = vmatpush3.bf16.xpose.msra.mxu0 %v385_v14 }
  0x2c   : > { %691 = vmatprep.subr.msk.bf16.mxu0 %vm371_vm0, %v715_v15 }
  0x33   : > { %678 = vmatpush3.bf16.xpose.msra.mxu0 %v388_v17 }
  0x34   : > { %692 = vmatprep.subr.msk.bf16.mxu0 %vm371_vm0, %v717_v18 }
  0x3b   : > { %680 = vmatpush3.bf16.xpose.msra.mxu0 %v391_v20 }
  0x3c   : > { %693 = vmatprep.subr.msk.bf16.mxu0 %vm371_vm0, %v719_v21 }
  0x43   : > { %682 = vmatpush3.bf16.xpose.msra.mxu0 %v394_v23 }
  0x44   : > { %694 = vmatprep.subr.msk.bf16.mxu0 %vm371_vm0, %v721_v24 }
  0x4b   : > { %684 = vmatpush3.bf16.xpose.msra.mxu0 %v397_v26 }
  0x52   : > { %686 = vmatmul.mubr.msk.bf16.vlgmr.msra.gmra.mrb[0].mxu0 %vm371_vm0, %v252_v0 }
  0x86   : > { %v289_v27 = vpop.permute.xlu0 %288 }
 0x125   : > { %v457_v28 = vpop.f32.mrb[0].mxu0 }
 0x126   : > { %v458_v29 = vadd.f32 %v457_v28, %v289_v27  ;;  %v459_v30 = vpop.f32.mrb[1].mxu0 }
 0x127   : > { %v460_v31 = vadd.f32 %v459_v30, %v289_v27  ;;  %v461_v32 = vpop.f32.mrb[2].mxu0 }
 0x128   : > { %464 = vst [vmem:[%s250_s6] sm:$0xff] %v458_v29  ;;  %v467_v33 = vrot.slane %v458_v29, 4  ;;  %v462_v34 = vpop.f32.mrb[3].mxu0  ;;  %v515_v62 = vsel %vm513_vm1, %v458_v29, 0.0 }
 0x129   : > { %465 = vst [vmem:[%s250_s6 + $0x8] sm:$0xff] %v460_v31  ;;  %v473_v35 = vrot.slane %v460_v31, 4  ;;  %v516_v0 = vsel %vm514_vm2, %v460_v31, 0.0  ;;  %v517_v3 = vrot.slane %v515_v62, 4 }
 0x12a   : > { %v468_v36 = vmax.f32 %v458_v29, %v467_v33  ;;  %v523_v5 = vrot.slane %v516_v0, 4 }
 0x12b   : > { %v474_v37 = vmax.f32 %v460_v31, %v473_v35  ;;  %v518_v9 = vadd.f32 %v517_v3, %v515_v62 }
 0x12c   : > { %v469_v38 = vrot.slane %v468_v36, 2  ;;  %v524_v11 = vadd.f32 %v523_v5, %v516_v0 }
 0x12d   : > { %v475_v39 = vrot.slane %v474_v37, 2  ;;  %v519_v13 = vrot.slane %v518_v9, 2 }
 0x12e   : > { %v470_v40 = vmax.f32 %v468_v36, %v469_v38  ;;  %v525_v14 = vrot.slane %v524_v11, 2 }
 0x12f   : > { %v476_v41 = vmax.f32 %v474_v37, %v475_v39  ;;  %v520_v15 = vadd.f32 %v519_v13, %v518_v9 }
 0x130   : > { %v471_v42 = vrot.slane %v470_v40, 1  ;;  %v526_v16 = vadd.f32 %v525_v14, %v524_v11 }
 0x131   : > { %v477_v43 = vrot.slane %v476_v41, 1  ;;  %v521_v17 = vrot.slane %v520_v15, 1 }
 0x132   : > { %v472_v44 = vmax.f32 %v470_v40, %v471_v42  ;;  %v527_v19 = vrot.slane %v526_v16, 1 }
 0x133   : > { %v478_v46 = vmax.f32 %v476_v41, %v477_v43  ;;  %v522_v24 = vadd.f32 %v521_v17, %v520_v15 }
 0x134   : > { %v479_v47 = vsub.f32 %v458_v29, %v472_v44  ;;  %v528_v26 = vadd.f32 %v527_v19, %v526_v16 }
 0x135   : > { %v480_v48 = vsub.f32 %v460_v31, %v478_v46 }
 0x136   : > { %v481_v49 = vmul.f32 1.442695, %v479_v47 }
 0x137   : > { %v483_v51 = vmul.f32 1.442695, %v480_v48 }
 0x138   : > { %723 = vpow2.f32 %v481_v49 }
 0x139   : > { %725 = vpow2.f32 %v483_v51 }
 0x142   : > { %v724_v57 = vpop.eup %723 }
 0x143   : > { %v726_v58 = vpop.eup %725  ;;  %v485_v59 = vrot.slane %v724_v57, 4 }
 0x144   : > { %v491_v60 = vrot.slane %v726_v58, 4 }
 0x145   : > { %v486_v61 = vadd.f32 %v724_v57, %v485_v59 }
 0x146   : > { %v492_v63 = vadd.f32 %v726_v58, %v491_v60 }
 0x147   : > { %v487_v1 = vrot.slane %v486_v61, 2 }
 0x148   : > { %v493_v2 = vrot.slane %v492_v63, 2 }
 0x149   : > { %v488_v4 = vadd.f32 %v487_v1, %v486_v61 }
 0x14a   : > { %v494_v6 = vadd.f32 %v493_v2, %v492_v63 }
 0x14b   : > { %v489_v7 = vrot.slane %v488_v4, 1 }
 0x14c   : > { %v495_v8 = vrot.slane %v494_v6, 1 }
 0x14d   : > { %v490_v10 = vadd.f32 %v489_v7, %v488_v4 }
 0x14e   : > { %v496_v12 = vadd.f32 %v495_v8, %v494_v6 }
 0x14f   : > { %727 = vlog2.f32 %v490_v10 }
 0x150   : > { %729 = vlog2.f32 %v496_v12 }
 0x159   : > { %v728_v18 = vpop.eup %727 }
 0x15a   : > { %v730_v20 = vpop.eup %729  ;;  %v498_v21 = vmul.f32 0.6931472, %v728_v18 }
 0x15b   : > { %v500_v22 = vmul.f32 0.6931472, %v730_v20 }
 0x15c   : > { %v501_v23 = vadd.f32 %v498_v21, %v472_v44 }
 0x15d   : > { %v502_v25 = vadd.f32 %v500_v22, %v478_v46 }
 0x15e   : > { %v529_v27 = vsub.f32 %v501_v23, %v522_v24 }
 0x15f   : > { %v530_v28 = vsub.f32 %v502_v25, %v528_v26 }
 0x160   : > { %v532_v29 = vsel %vm531_vm3, %v529_v27, 0.0 }
 0x161   : > { %v533_v30 = vsel %vm531_vm3, %v530_v28, 0.0 }
 0x162   : > { %v534_v31 = vadd.f32 %v533_v30, %v532_v29 }
 0x164   : > { %535 = vadd.xlane.f32.xlu0 %v534_v31 }
 0x1f1   : > { %v536_v32 = vpop.xlane.xlu0 %535 }
 0x1f2   : > { %v537_v33 = vrot.slane %v536_v32, 4 }
 0x1f4   : > { %v538_v34 = vadd.f32 %v537_v33, %v536_v32 }
 0x1f6   : > { %v539_v35 = vrot.slane %v538_v34, 2 }
 0x1f8   : > { %v540_v36 = vadd.f32 %v539_v35, %v538_v34 }
 0x1fa   : > { %v541_v37 = vrot.slane %v540_v36, 1 }
 0x1fc   : > { %v542_v38 = vadd.f32 %v541_v37, %v540_v36 }
 0x1fe   : > { %695 = vpush %v542_v38 }
 0x22f   : > { %s696_s14 = spop %695 }
 0x230   : > { %v544_v39 = vstv %s696_s14 }
 0x231   : > { %545 = vst [vmem:[%s245_s13] sm:$0x1] %v544_v39 }
 0x232 PF: > { %s16_s18 = sadd.s32 1, %s737_s18  }
 0x233   : > { %p13_p4 = scmp.ge.s32.totalorder %s16_s18, 4  }
 0x235   :  { %15 = sbr.rel (!%p13_p4) target bundleno = 1 (0x1), region = 81 }

</bundles_post_ra>
